<compile_context>
chip_gen: v7x
topology: tpu7x:2x2x1
jax: 0.10.0
libtpu: 0.0.40
codegen_flags: <defaults>
</compile_context>

<pallas_src>
import functools

import jax
import jax.numpy as jnp
from jax import lax
from jax.experimental import pallas as pl
from jax.experimental.pallas import tpu as pltpu


# --------------------------------------------------------------------------
# Kernel
# --------------------------------------------------------------------------
def _cascade_kernel(x_ref, w_ref, b_ref, o_ref, pad_ref, *, n_blks, c_in):
    # x_ref:  (1, H, W*C)            one batch element, lane-dense slab
    # w_ref:  (n_blks*6, (W+2)*C, W*C)  banded weights (3 per conv, 2 convs/blk)
    # b_ref:  (n_blks*2, H, W*C)     pre-broadcast biases
    # o_ref:  (1, H, W*C)
    # pad_ref: VMEM scratch (H+2, (W+2)*C) for "same" padding
    _, H, WC = x_ref.shape

    # Zero the padded scratch once per grid step.  Interior is fully
    # overwritten before each conv; the 1-pixel border stays zero.
    pad_ref[...] = jnp.zeros_like(pad_ref)

    x = x_ref[0].astype(jnp.float32)                      # (H, W*C)

    def conv3x3(inp, w_base, bias):
        # write interior of the padded buffer (rows 1..H, cols C..C+W*C)
        pad_ref[1:H + 1, c_in:c_in + WC] = inp
        acc = bias                                        # (H, W*C), f32
        for dy in range(3):                               # 3 banded matmuls
            acc = acc + jnp.dot(
                pad_ref[dy:dy + H, :],                    # (H, (W+2)*C)
                w_ref[w_base + dy],                       # ((W+2)*C, W*C)
                preferred_element_type=jnp.float32)
        return acc

    for blk in range(n_blks):                             # fused cascade
        b1 = b_ref[2 * blk].astype(jnp.float32)
        b2 = b_ref[2 * blk + 1].astype(jnp.float32)
        h = jnp.maximum(conv3x3(x, 6 * blk, b1), 0.0)     # conv1 + ReLU
        x = x + conv3x3(h, 6 * blk + 3, b2)               # conv2 + residual

    o_ref[0] = x.astype(o_ref.dtype)


# --------------------------------------------------------------------------
# Wrapper-side weight preprocessing: 3x3 HWIO conv -> 3 banded matrices so the
# conv over a (H, W*C) slab becomes   out = sum_dy pad[dy:dy+H, :] @ B[dy].
# --------------------------------------------------------------------------
def _band_weights(w, width):
    """w: (3, 3, C, C) HWIO -> (3, (width+2)*C, width*C)."""
    C = w.shape[2]
    idx = jnp.arange(width)
    bands = []
    for dy in range(3):
        B = jnp.zeros(((width + 2) * C, width * C), w.dtype)
        for dx in range(3):
            # shift matrix S[x+dx, x] = 1  -> places w[dy,dx] on a block band
            S = jnp.zeros((width + 2, width), w.dtype).at[idx + dx, idx].set(1.0)
            B = B + jnp.kron(S, w[dy, dx])
        bands.append(B)
    return jnp.stack(bands)


def cascaded_resnet_blocks_pallas(x, params):
    """Cascaded_resnet_blocks.forward.

    x: (N, H, W, C) NHWC float32.
    params: list of (w1, b1, w2, b2) with w HWIO (3,3,C,C), b (C,).
    """
    N, H, W, C = x.shape
    n_blks = len(params)
    WC, PWC = W * C, (W + 2) * C

    band_list, bias_list = [], []
    for (w1, b1, w2, b2) in params:
        band_list.append(_band_weights(w1, W))            # (3, PWC, WC)
        band_list.append(_band_weights(w2, W))
        bias_list.append(jnp.tile(b1, W))                  # (WC,)
        bias_list.append(jnp.tile(b2, W))
    w_band = jnp.concatenate(band_list, axis=0)            # (n_blks*6, PWC, WC)
    bias = jnp.broadcast_to(
        jnp.stack(bias_list).astype(jnp.float32)[:, None, :],
        (2 * n_blks, H, WC))                               # (n_blks*2, H, WC)

    x2 = x.reshape(N, H, WC)                               # lane-dense I/O slab

    kernel = functools.partial(_cascade_kernel, n_blks=n_blks, c_in=C)
    out = pl.pallas_call(
        kernel,
        out_shape=jax.ShapeDtypeStruct((N, H, WC), x.dtype),
        grid_spec=pltpu.PrefetchScalarGridSpec(
            num_scalar_prefetch=0,
            grid=(N,),
            in_specs=[
                pl.BlockSpec((1, H, WC), lambda n: (n, 0, 0)),
                pl.BlockSpec((6 * n_blks, PWC, WC), lambda n: (0, 0, 0)),
                pl.BlockSpec((2 * n_blks, H, WC), lambda n: (0, 0, 0)),
            ],
            out_specs=pl.BlockSpec((1, H, WC), lambda n: (n, 0, 0)),
            scratch_shapes=[pltpu.VMEM((H + 2, PWC), jnp.float32)],
        ),
        compiler_params=pltpu.CompilerParams(
            dimension_semantics=("parallel",)),
    )(x2, w_band, bias)
    return out.reshape(N, H, W, C)


# --------------------------------------------------------------------------
# Deterministic parameter init (xavier_normal_ weights, zero biases)
# --------------------------------------------------------------------------
def init_params(key, n_in, n_blks):
    params = []
    std = (2.0 / (n_in * 9 + n_in * 9)) ** 0.5
    for _ in range(n_blks):
        key, k1, k2 = jax.random.split(key, 3)
        w1 = std * jax.random.normal(k1, (3, 3, n_in, n_in), jnp.float32)
        w2 = std * jax.random.normal(k2, (3, 3, n_in, n_in), jnp.float32)
        b1 = jnp.zeros((n_in,), jnp.float32)
        b2 = jnp.zeros((n_in,), jnp.float32)
        params.append((w1, b1, w2, b2))
    return params


# --------------------------------------------------------------------------
# Pure-JAX reference (silent sanity check)
# --------------------------------------------------------------------------
def _conv_ref(x, w, b):
    y = lax.conv_general_dilated(
        x, w, window_strides=(1, 1), padding="SAME",
        dimension_numbers=("NHWC", "HWIO", "NHWC"))
    return y + b.reshape(1, 1, 1, -1)


def cascaded_ref(x, params):
    for (w1, b1, w2, b2) in params:
        h = jnp.maximum(_conv_ref(x, w1, b1), 0.0)
        h = _conv_ref(h, w2, b2)
        x = x + h
    return x


if __name__ == "__main__":
    key = jax.random.PRNGKey(0)
    kx, kp = jax.random.split(key)

    N, C, H, W = 2, 4, 16, 16          # NCHW shape implied by the module
    n_blks = 2

    x_nchw = jax.random.normal(kx, (N, C, H, W), jnp.float32)
    x_nhwc = jnp.transpose(x_nchw, (0, 2, 3, 1))   # NHWC inside the kernel

    params = init_params(kp, C, n_blks)

    out_nhwc = cascaded_resnet_blocks_pallas(x_nhwc, params)
    out_nhwc = jax.block_until_ready(out_nhwc)

    # sanity check vs pure-JAX reference
    ref = cascaded_ref(x_nhwc, params)
    assert jnp.allclose(out_nhwc, ref, atol=1e-4, rtol=1e-4), "mismatch vs reference"

    # back to NCHW to match the PyTorch output convention
    out_nchw = jnp.transpose(out_nhwc, (0, 3, 1, 2))
    assert out_nchw.shape == (N, C, H, W)

    print("KERNEL_OK")
</pallas_src>

<mosaic_0001>
module attributes {stable_mosaic.version = 11 : i64} {
  func.func @_cascade_kernel(%arg0: i32, %arg1: memref<1x16x64xf32, #tpu.memory_space<vmem>>, %arg2: memref<12x72x64xf32, #tpu.memory_space<vmem>>, %arg3: memref<4x16x64xf32, #tpu.memory_space<vmem>>, %arg4: memref<1x16x64xf32, #tpu.memory_space<vmem>>, %arg5: memref<18x72xf32, #tpu.memory_space<vmem>>) attributes {dimension_semantics = [#tpu.dimension_semantics<parallel>], iteration_bounds = array<i64: 2>, scalar_prefetch = 0 : i64, scratch_operands = 1 : i64, tpu.core_type = #tpu.core_type<tc>, window_params = [{transform_indices = @transform_0, window_bounds = array<i64: 1, 16, 64>}, {pipeline_mode = #tpu.pipeline_mode<synchronous>, transform_indices = @transform_1, window_bounds = array<i64: 12, 72, 64>}, {pipeline_mode = #tpu.pipeline_mode<synchronous>, transform_indices = @transform_2, window_bounds = array<i64: 4, 16, 64>}, {transform_indices = @transform_3, window_bounds = array<i64: 1, 16, 64>}]} {
    %cst = arith.constant 0.000000e+00 : f32
    %0 = vector.broadcast %cst : f32 to vector<18x72xf32>
    %c0 = arith.constant 0 : index
    %c0_0 = arith.constant 0 : index
    %1 = vector.load %arg5[%c0, %c0_0] : memref<18x72xf32, #tpu.memory_space<vmem>>, vector<18x72xf32>
    tpu.vector_store %arg5[%c0, %c0_0], %0 {strides = array<i32>} : memref<18x72xf32, #tpu.memory_space<vmem>>, vector<18x72xf32>,
    %c0_1 = arith.constant 0 : index
    %c0_2 = arith.constant 0 : index
    %c0_3 = arith.constant 0 : index
    %2 = vector.load %arg1[%c0_1, %c0_2, %c0_3] : memref<1x16x64xf32, #tpu.memory_space<vmem>>, vector<1x16x64xf32>
    %3 = vector.shape_cast %2 : vector<1x16x64xf32> to vector<16x64xf32>
    %c0_4 = arith.constant 0 : index
    %c0_5 = arith.constant 0 : index
    %c0_6 = arith.constant 0 : index
    %4 = vector.load %arg3[%c0_4, %c0_5, %c0_6] : memref<4x16x64xf32, #tpu.memory_space<vmem>>, vector<1x16x64xf32>
    %5 = vector.shape_cast %4 : vector<1x16x64xf32> to vector<16x64xf32>
    %c1 = arith.constant 1 : index
    %c0_7 = arith.constant 0 : index
    %c0_8 = arith.constant 0 : index
    %6 = vector.load %arg3[%c1, %c0_7, %c0_8] : memref<4x16x64xf32, #tpu.memory_space<vmem>>, vector<1x16x64xf32>
    %7 = vector.shape_cast %6 : vector<1x16x64xf32> to vector<16x64xf32>
    %c1_9 = arith.constant 1 : index
    %c4 = arith.constant 4 : index
    %8 = vector.load %arg5[%c1_9, %c4] : memref<18x72xf32, #tpu.memory_space<vmem>>, vector<16x64xf32>
    tpu.vector_store %arg5[%c1_9, %c4], %3 {strides = array<i32>} : memref<18x72xf32, #tpu.memory_space<vmem>>, vector<16x64xf32>,
    %c0_10 = arith.constant 0 : index
    %c0_11 = arith.constant 0 : index
    %9 = vector.load %arg5[%c0_10, %c0_11] : memref<18x72xf32, #tpu.memory_space<vmem>>, vector<16x72xf32>
    %c0_12 = arith.constant 0 : index
    %c0_13 = arith.constant 0 : index
    %c0_14 = arith.constant 0 : index
    %10 = vector.load %arg2[%c0_12, %c0_13, %c0_14] : memref<12x72x64xf32, #tpu.memory_space<vmem>>, vector<1x72x64xf32>
    %11 = vector.shape_cast %10 : vector<1x72x64xf32> to vector<72x64xf32>
    %cst_15 = arith.constant dense<0.000000e+00> : vector<16x64xf32>
    %12 = tpu.matmul %9, %11, %cst_15 {dimension_numbers = #tpu.dot_dimension_numbers<[1], [0], [0], [1], [0, 0, 1, 1], [], []>} : vector<16x72xf32>, vector<72x64xf32>, vector<16x64xf32> -> vector<16x64xf32>
    %13 = arith.addf %5, %12 : vector<16x64xf32>
    %c1_16 = arith.constant 1 : index
    %c0_17 = arith.constant 0 : index
    %14 = vector.load %arg5[%c1_16, %c0_17] : memref<18x72xf32, #tpu.memory_space<vmem>>, vector<16x72xf32>
    %c1_18 = arith.constant 1 : index
    %c0_19 = arith.constant 0 : index
    %c0_20 = arith.constant 0 : index
    %15 = vector.load %arg2[%c1_18, %c0_19, %c0_20] : memref<12x72x64xf32, #tpu.memory_space<vmem>>, vector<1x72x64xf32>
    %16 = vector.shape_cast %15 : vector<1x72x64xf32> to vector<72x64xf32>
    %cst_21 = arith.constant dense<0.000000e+00> : vector<16x64xf32>
    %17 = tpu.matmul %14, %16, %cst_21 {dimension_numbers = #tpu.dot_dimension_numbers<[1], [0], [0], [1], [0, 0, 1, 1], [], []>} : vector<16x72xf32>, vector<72x64xf32>, vector<16x64xf32> -> vector<16x64xf32>
    %18 = arith.addf %13, %17 : vector<16x64xf32>
    %c2 = arith.constant 2 : index
    %c0_22 = arith.constant 0 : index
    %19 = vector.load %arg5[%c2, %c0_22] : memref<18x72xf32, #tpu.memory_space<vmem>>, vector<16x72xf32>
    %c2_23 = arith.constant 2 : index
    %c0_24 = arith.constant 0 : index
    %c0_25 = arith.constant 0 : index
    %20 = vector.load %arg2[%c2_23, %c0_24, %c0_25] : memref<12x72x64xf32, #tpu.memory_space<vmem>>, vector<1x72x64xf32>
    %21 = vector.shape_cast %20 : vector<1x72x64xf32> to vector<72x64xf32>
    %cst_26 = arith.constant dense<0.000000e+00> : vector<16x64xf32>
    %22 = tpu.matmul %19, %21, %cst_26 {dimension_numbers = #tpu.dot_dimension_numbers<[1], [0], [0], [1], [0, 0, 1, 1], [], []>} : vector<16x72xf32>, vector<72x64xf32>, vector<16x64xf32> -> vector<16x64xf32>
    %23 = arith.addf %18, %22 : vector<16x64xf32>
    %cst_27 = arith.constant 0.000000e+00 : f32
    %24 = vector.broadcast %cst_27 : f32 to vector<16x64xf32>
    %25 = arith.maximumf %23, %24 : vector<16x64xf32>
    %c1_28 = arith.constant 1 : index
    %c4_29 = arith.constant 4 : index
    %26 = vector.load %arg5[%c1_28, %c4_29] : memref<18x72xf32, #tpu.memory_space<vmem>>, vector<16x64xf32>
    tpu.vector_store %arg5[%c1_28, %c4_29], %25 {strides = array<i32>} : memref<18x72xf32, #tpu.memory_space<vmem>>, vector<16x64xf32>,
    %c0_30 = arith.constant 0 : index
    %c0_31 = arith.constant 0 : index
    %27 = vector.load %arg5[%c0_30, %c0_31] : memref<18x72xf32, #tpu.memory_space<vmem>>, vector<16x72xf32>
    %c3 = arith.constant 3 : index
    %c0_32 = arith.constant 0 : index
    %c0_33 = arith.constant 0 : index
    %28 = vector.load %arg2[%c3, %c0_32, %c0_33] : memref<12x72x64xf32, #tpu.memory_space<vmem>>, vector<1x72x64xf32>
    %29 = vector.shape_cast %28 : vector<1x72x64xf32> to vector<72x64xf32>
    %cst_34 = arith.constant dense<0.000000e+00> : vector<16x64xf32>
    %30 = tpu.matmul %27, %29, %cst_34 {dimension_numbers = #tpu.dot_dimension_numbers<[1], [0], [0], [1], [0, 0, 1, 1], [], []>} : vector<16x72xf32>, vector<72x64xf32>, vector<16x64xf32> -> vector<16x64xf32>
    %31 = arith.addf %7, %30 : vector<16x64xf32>
    %c1_35 = arith.constant 1 : index
    %c0_36 = arith.constant 0 : index
    %32 = vector.load %arg5[%c1_35, %c0_36] : memref<18x72xf32, #tpu.memory_space<vmem>>, vector<16x72xf32>
    %c4_37 = arith.constant 4 : index
    %c0_38 = arith.constant 0 : index
    %c0_39 = arith.constant 0 : index
    %33 = vector.load %arg2[%c4_37, %c0_38, %c0_39] : memref<12x72x64xf32, #tpu.memory_space<vmem>>, vector<1x72x64xf32>
    %34 = vector.shape_cast %33 : vector<1x72x64xf32> to vector<72x64xf32>
    %cst_40 = arith.constant dense<0.000000e+00> : vector<16x64xf32>
    %35 = tpu.matmul %32, %34, %cst_40 {dimension_numbers = #tpu.dot_dimension_numbers<[1], [0], [0], [1], [0, 0, 1, 1], [], []>} : vector<16x72xf32>, vector<72x64xf32>, vector<16x64xf32> -> vector<16x64xf32>
    %36 = arith.addf %31, %35 : vector<16x64xf32>
    %c2_41 = arith.constant 2 : index
    %c0_42 = arith.constant 0 : index
    %37 = vector.load %arg5[%c2_41, %c0_42] : memref<18x72xf32, #tpu.memory_space<vmem>>, vector<16x72xf32>
    %c5 = arith.constant 5 : index
    %c0_43 = arith.constant 0 : index
    %c0_44 = arith.constant 0 : index
    %38 = vector.load %arg2[%c5, %c0_43, %c0_44] : memref<12x72x64xf32, #tpu.memory_space<vmem>>, vector<1x72x64xf32>
    %39 = vector.shape_cast %38 : vector<1x72x64xf32> to vector<72x64xf32>
    %cst_45 = arith.constant dense<0.000000e+00> : vector<16x64xf32>
    %40 = tpu.matmul %37, %39, %cst_45 {dimension_numbers = #tpu.dot_dimension_numbers<[1], [0], [0], [1], [0, 0, 1, 1], [], []>} : vector<16x72xf32>, vector<72x64xf32>, vector<16x64xf32> -> vector<16x64xf32>
    %41 = arith.addf %36, %40 : vector<16x64xf32>
    %42 = arith.addf %3, %41 : vector<16x64xf32>
    %c2_46 = arith.constant 2 : index
    %c0_47 = arith.constant 0 : index
    %c0_48 = arith.constant 0 : index
    %43 = vector.load %arg3[%c2_46, %c0_47, %c0_48] : memref<4x16x64xf32, #tpu.memory_space<vmem>>, vector<1x16x64xf32>
    %44 = vector.shape_cast %43 : vector<1x16x64xf32> to vector<16x64xf32>
    %c3_49 = arith.constant 3 : index
    %c0_50 = arith.constant 0 : index
    %c0_51 = arith.constant 0 : index
    %45 = vector.load %arg3[%c3_49, %c0_50, %c0_51] : memref<4x16x64xf32, #tpu.memory_space<vmem>>, vector<1x16x64xf32>
    %46 = vector.shape_cast %45 : vector<1x16x64xf32> to vector<16x64xf32>
    %c1_52 = arith.constant 1 : index
    %c4_53 = arith.constant 4 : index
    %47 = vector.load %arg5[%c1_52, %c4_53] : memref<18x72xf32, #tpu.memory_space<vmem>>, vector<16x64xf32>
    tpu.vector_store %arg5[%c1_52, %c4_53], %42 {strides = array<i32>} : memref<18x72xf32, #tpu.memory_space<vmem>>, vector<16x64xf32>,
    %c0_54 = arith.constant 0 : index
    %c0_55 = arith.constant 0 : index
    %48 = vector.load %arg5[%c0_54, %c0_55] : memref<18x72xf32, #tpu.memory_space<vmem>>, vector<16x72xf32>
    %c6 = arith.constant 6 : index
    %c0_56 = arith.constant 0 : index
    %c0_57 = arith.constant 0 : index
    %49 = vector.load %arg2[%c6, %c0_56, %c0_57] : memref<12x72x64xf32, #tpu.memory_space<vmem>>, vector<1x72x64xf32>
    %50 = vector.shape_cast %49 : vector<1x72x64xf32> to vector<72x64xf32>
    %cst_58 = arith.constant dense<0.000000e+00> : vector<16x64xf32>
    %51 = tpu.matmul %48, %50, %cst_58 {dimension_numbers = #tpu.dot_dimension_numbers<[1], [0], [0], [1], [0, 0, 1, 1], [], []>} : vector<16x72xf32>, vector<72x64xf32>, vector<16x64xf32> -> vector<16x64xf32>
    %52 = arith.addf %44, %51 : vector<16x64xf32>
    %c1_59 = arith.constant 1 : index
    %c0_60 = arith.constant 0 : index
    %53 = vector.load %arg5[%c1_59, %c0_60] : memref<18x72xf32, #tpu.memory_space<vmem>>, vector<16x72xf32>
    %c7 = arith.constant 7 : index
    %c0_61 = arith.constant 0 : index
    %c0_62 = arith.constant 0 : index
    %54 = vector.load %arg2[%c7, %c0_61, %c0_62] : memref<12x72x64xf32, #tpu.memory_space<vmem>>, vector<1x72x64xf32>
    %55 = vector.shape_cast %54 : vector<1x72x64xf32> to vector<72x64xf32>
    %cst_63 = arith.constant dense<0.000000e+00> : vector<16x64xf32>
    %56 = tpu.matmul %53, %55, %cst_63 {dimension_numbers = #tpu.dot_dimension_numbers<[1], [0], [0], [1], [0, 0, 1, 1], [], []>} : vector<16x72xf32>, vector<72x64xf32>, vector<16x64xf32> -> vector<16x64xf32>
    %57 = arith.addf %52, %56 : vector<16x64xf32>
    %c2_64 = arith.constant 2 : index
    %c0_65 = arith.constant 0 : index
    %58 = vector.load %arg5[%c2_64, %c0_65] : memref<18x72xf32, #tpu.memory_space<vmem>>, vector<16x72xf32>
    %c8 = arith.constant 8 : index
    %c0_66 = arith.constant 0 : index
    %c0_67 = arith.constant 0 : index
    %59 = vector.load %arg2[%c8, %c0_66, %c0_67] : memref<12x72x64xf32, #tpu.memory_space<vmem>>, vector<1x72x64xf32>
    %60 = vector.shape_cast %59 : vector<1x72x64xf32> to vector<72x64xf32>
    %cst_68 = arith.constant dense<0.000000e+00> : vector<16x64xf32>
    %61 = tpu.matmul %58, %60, %cst_68 {dimension_numbers = #tpu.dot_dimension_numbers<[1], [0], [0], [1], [0, 0, 1, 1], [], []>} : vector<16x72xf32>, vector<72x64xf32>, vector<16x64xf32> -> vector<16x64xf32>
    %62 = arith.addf %57, %61 : vector<16x64xf32>
    %cst_69 = arith.constant 0.000000e+00 : f32
    %63 = vector.broadcast %cst_69 : f32 to vector<16x64xf32>
    %64 = arith.maximumf %62, %63 : vector<16x64xf32>
    %c1_70 = arith.constant 1 : index
    %c4_71 = arith.constant 4 : index
    %65 = vector.load %arg5[%c1_70, %c4_71] : memref<18x72xf32, #tpu.memory_space<vmem>>, vector<16x64xf32>
    tpu.vector_store %arg5[%c1_70, %c4_71], %64 {strides = array<i32>} : memref<18x72xf32, #tpu.memory_space<vmem>>, vector<16x64xf32>,
    %c0_72 = arith.constant 0 : index
    %c0_73 = arith.constant 0 : index
    %66 = vector.load %arg5[%c0_72, %c0_73] : memref<18x72xf32, #tpu.memory_space<vmem>>, vector<16x72xf32>
    %c9 = arith.constant 9 : index
    %c0_74 = arith.constant 0 : index
    %c0_75 = arith.constant 0 : index
    %67 = vector.load %arg2[%c9, %c0_74, %c0_75] : memref<12x72x64xf32, #tpu.memory_space<vmem>>, vector<1x72x64xf32>
    %68 = vector.shape_cast %67 : vector<1x72x64xf32> to vector<72x64xf32>
    %cst_76 = arith.constant dense<0.000000e+00> : vector<16x64xf32>
    %69 = tpu.matmul %66, %68, %cst_76 {dimension_numbers = #tpu.dot_dimension_numbers<[1], [0], [0], [1], [0, 0, 1, 1], [], []>} : vector<16x72xf32>, vector<72x64xf32>, vector<16x64xf32> -> vector<16x64xf32>
    %70 = arith.addf %46, %69 : vector<16x64xf32>
    %c1_77 = arith.constant 1 : index
    %c0_78 = arith.constant 0 : index
    %71 = vector.load %arg5[%c1_77, %c0_78] : memref<18x72xf32, #tpu.memory_space<vmem>>, vector<16x72xf32>
    %c10 = arith.constant 10 : index
    %c0_79 = arith.constant 0 : index
    %c0_80 = arith.constant 0 : index
    %72 = vector.load %arg2[%c10, %c0_79, %c0_80] : memref<12x72x64xf32, #tpu.memory_space<vmem>>, vector<1x72x64xf32>
    %73 = vector.shape_cast %72 : vector<1x72x64xf32> to vector<72x64xf32>
    %cst_81 = arith.constant dense<0.000000e+00> : vector<16x64xf32>
    %74 = tpu.matmul %71, %73, %cst_81 {dimension_numbers = #tpu.dot_dimension_numbers<[1], [0], [0], [1], [0, 0, 1, 1], [], []>} : vector<16x72xf32>, vector<72x64xf32>, vector<16x64xf32> -> vector<16x64xf32>
    %75 = arith.addf %70, %74 : vector<16x64xf32>
    %c2_82 = arith.constant 2 : index
    %c0_83 = arith.constant 0 : index
    %76 = vector.load %arg5[%c2_82, %c0_83] : memref<18x72xf32, #tpu.memory_space<vmem>>, vector<16x72xf32>
    %c11 = arith.constant 11 : index
    %c0_84 = arith.constant 0 : index
    %c0_85 = arith.constant 0 : index
    %77 = vector.load %arg2[%c11, %c0_84, %c0_85] : memref<12x72x64xf32, #tpu.memory_space<vmem>>, vector<1x72x64xf32>
    %78 = vector.shape_cast %77 : vector<1x72x64xf32> to vector<72x64xf32>
    %cst_86 = arith.constant dense<0.000000e+00> : vector<16x64xf32>
    %79 = tpu.matmul %76, %78, %cst_86 {dimension_numbers = #tpu.dot_dimension_numbers<[1], [0], [0], [1], [0, 0, 1, 1], [], []>} : vector<16x72xf32>, vector<72x64xf32>, vector<16x64xf32> -> vector<16x64xf32>
    %80 = arith.addf %75, %79 : vector<16x64xf32>
    %81 = arith.addf %42, %80 : vector<16x64xf32>
    %c0_87 = arith.constant 0 : index
    %c0_88 = arith.constant 0 : index
    %c0_89 = arith.constant 0 : index
    %82 = vector.load %arg4[%c0_87, %c0_88, %c0_89] : memref<1x16x64xf32, #tpu.memory_space<vmem>>, vector<1x16x64xf32>
    %83 = vector.shape_cast %82 : vector<1x16x64xf32> to vector<16x64xf32>
    %84 = vector.shape_cast %81 : vector<16x64xf32> to vector<1x16x64xf32>
    tpu.vector_store %arg4[%c0_87, %c0_88, %c0_89], %84 {strides = array<i32>} : memref<1x16x64xf32, #tpu.memory_space<vmem>>, vector<1x16x64xf32>,
    return
  }
  func.func @transform_0(%arg0: i32) -> (i32, i32, i32) {
    %c0_i32 = arith.constant 0 : i32
    %c0_i32_0 = arith.constant 0 : i32
    %c0_i32_1 = arith.constant 0 : i32
    return %arg0, %c0_i32, %c0_i32_0 : i32, i32, i32
  }
  func.func @transform_1(%arg0: i32) -> (i32, i32, i32) {
    %c0_i32 = arith.constant 0 : i32
    %c0_i32_0 = arith.constant 0 : i32
    %c0_i32_1 = arith.constant 0 : i32
    %c0_i32_2 = arith.constant 0 : i32
    return %c0_i32, %c0_i32_0, %c0_i32_1 : i32, i32, i32
  }
  func.func @transform_2(%arg0: i32) -> (i32, i32, i32) {
    %c0_i32 = arith.constant 0 : i32
    %c0_i32_0 = arith.constant 0 : i32
    %c0_i32_1 = arith.constant 0 : i32
    %c0_i32_2 = arith.constant 0 : i32
    return %c0_i32, %c0_i32_0, %c0_i32_1 : i32, i32, i32
  }
  func.func @transform_3(%arg0: i32) -> (i32, i32, i32) {
    %c0_i32 = arith.constant 0 : i32
    %c0_i32_0 = arith.constant 0 : i32
    %c0_i32_1 = arith.constant 0 : i32
    return %arg0, %c0_i32, %c0_i32_0 : i32, i32, i32
  }
}

</mosaic_0001>

<bundles_post_ra>
// kernel: tpu_custom_call.1
= control target key start
LH: loop header
LB: loop body
LE: loop exit
PB: predicated region body
PF: predicated region fallthrough
CT: control target
= control target key end

     0   :  { %8 = vsyncpa [#allocation4], 0  ;;  %s2838_s0 = inlined_call_operand.vmem [shape: f32[2,16,64], index: 0, kind: input, shape index: {}]   ;;  %s2839_s1 = inlined_call_operand.vmem [shape: f32[12,72,64], index: 1, kind: input, shape index: {}]   ;;  %s2840_s2 = inlined_call_operand.vmem [shape: f32[4,16,64], index: 2, kind: input, shape index: {}]   ;;  %s2841_s3 = inlined_call_operand.hbm [shape: f32[2,16,64], index: 3, kind: output, shape index: {}]  }
   0x1   :  { %10 = vsyncpa [#allocation4 + $0x1], 0  ;;  %s2329_s12 = smov 0   ;;  %s2331_s13 = smov 0  }
   0x2   :  { %s2333_s14 = smov 0   ;;  %s2335_s15 = smov 0  }
   0x3 LB: > { %s2350_s16 = sadd.s32 4294967295, %s2302_s15   ;;  %s1454_s17 = sadd.s32 4294967294, %s2302_s15   ;;  %s2302_s15 = sphi %s2335_s15, %s2847_s15   ;;  %s2298_s14 = sphi %s2333_s14, %s2846_s14   ;;  %s2294_s13 = sphi %s2331_s13, %s2845_s13   ;;  %s2290_s12 = sphi %s2329_s12, %s2844_s12  }
   0x4   : > { %s2354_s18 = sadd.s32 1, %s2302_s15   ;;  %s91_s19 = sadd.s32 1, %s2298_s14 }
   0x5   : > { %s88_s20 = ssub.s32 %s2302_s15, %s2354_s18  ;;  %p101_p0 = scmp.ne.s32.totalorder %s2298_s14, %s2294_s13 }
   0x6   : > { %p89_p1 = scmp.eq.s32.totalorder %s88_s20, 0  ;;  %p102_p2 = scmp.eq.s32.totalorder %s2350_s16, 1 }
   0x7   : > { %p107_p3 = scmp.ne.s32.totalorder %s2294_s13, %s2290_s12  ;;  %p108_p4 = scmp.eq.s32.totalorder %s1454_s17, 1 }
   0x8   : > { %s2365_s21 = scalar_select %p89_p1, %s2298_s14, %s91_s19  }
   0x9   : > { %p2367_p5 = por %p102_p2, %p101_p0  ;;  %p2371_p6 = por %p108_p4, %p107_p3 }
   0xa   : > { %p1457_p7 = scmp.ge.s32.totalorder %s2302_s15, 1  ;;  %p140_p8 = scmp.lt.s32.totalorder %s2302_s15, 3 }
   0xc   : > { %p141_p9 = pnand %p1457_p7, %p140_p8 }
   0xd   : > { %p164_p10 = scmp.lt.s32.totalorder (!%p141_p9), %s2350_s16, 1  ;;  %v194_v0 = vld [vmem:[%s2839_s1] sm:$0xff] (!%p141_p9)  ;;  %v195_v1 = vld [vmem:[%s2839_s1 + $0x8] sm:$0xff] (!%p141_p9)  ;;  %v196_v2 = vld [vmem:[%s2839_s1 + $0x10] sm:$0xff] (!%p141_p9)  ;;  %vm169_vm0 = vcmask (!%p141_p9), 588800   ;;  %vm172_vm1 = vcmask (!%p141_p9), 582656  }
   0xe   : > { %144 = sbr.rel (%p141_p9) target bundleno = 1555 (0x613), region = 32  ;;  %v1981_v3 = vpack.c.bf16 (!%p141_p9), %v195_v1, %v194_v0  ;;  %v197_v4 = vld [vmem:[%s2839_s1 + $0x18] sm:$0xff] (!%p141_p9)  ;;  %v2304_v6 = vmov (!%p141_p9), 0.0   ;;  %v198_v7 = vld [vmem:[%s2839_s1 + $0x20] sm:$0xff] (!%p141_p9)  ;;  %v199_v8 = vld [vmem:[%s2839_s1 + $0x28] sm:$0xff] (!%p141_p9)  ;;  %s2305_s27 = smov (!%p141_p9), 4  }
   0xf   : > { %v1985_v5 = vpack.c.bf16 (!%p141_p9), %v197_v4, %v196_v2  ;;  %170 = vst.msk [vmem:[#allocation2] sm:$0xff] (!%p141_p9), %vm169_vm0, %v2304_v6  ;;  %171 = vst.msk [vmem:[#allocation2 + $0x8] sm:$0xff] (!%p141_p9), %vm169_vm0, %v2304_v6  ;;  %v1989_v9 = vpack.c.bf16 (!%p141_p9), %v199_v8, %v198_v7  ;;  %v200_v11 = vld [vmem:[%s2839_s1 + $0x30] sm:$0xff] (!%p141_p9)  ;;  %v201_v12 = vld [vmem:[%s2839_s1 + $0x38] sm:$0xff] (!%p141_p9)  ;;  %vm189_vm2 = vcmask (!%p141_p9), 556064   ;;  %s161_s7 = sand.u32 (!%p141_p9), 1, %s2294_s13  }
  0x10   : > { %173 = vst.msk [vmem:[#allocation2 + $0x10] sm:$0x3] (!%p141_p9), %vm172_vm1, %v2304_v6  ;;  %1982 = vmatprep.subr.bf16.mxu0 (!%p141_p9), %v1981_v3  ;;  %v1993_v14 = vpack.c.bf16 (!%p141_p9), %v201_v12, %v200_v11  ;;  %v202_v15 = vld [vmem:[%s2839_s1 + $0x40] sm:$0xff] (!%p141_p9)  ;;  %v1465_v16 = vld [vmem:[%s2839_s1 + $0x48] sm:$0xff] (!%p141_p9)  ;;  %v1466_v17 = vld [vmem:[%s2839_s1 + $0x50] sm:$0xff] (!%p141_p9)  ;;  %s1458_s8 = sshll.u32 (!%p141_p9), %s161_s7, 4 }
  0x11   : > { %1984 = vmatpush3.bf16.msra.mxu0 (!%p141_p9), %v1981_v3  ;;  %v1997_v18 = vpack.c.bf16 (!%p141_p9), %v1466_v17, %v1465_v16  ;;  %v1467_v22 = vld [vmem:[%s2839_s1 + $0x58] sm:$0xff] (!%p141_p9)  ;;  %v1468_v23 = vld [vmem:[%s2839_s1 + $0x60] sm:$0xff] (!%p141_p9)  ;;  %v1469_v26 = vld [vmem:[%s2839_s1 + $0x68] sm:$0xff] (!%p141_p9)  ;;  %vm1375_vm3 = vcmask (!%p141_p9), 523264   ;;  %s2306_s29 = smov (!%p141_p9), [#allocation3]  }
  0x12   : > { %1986 = vmatprep.subr.bf16.mxu0 (!%p141_p9), %v1985_v5  ;;  %v2001_v24 = vpack.c.bf16 (!%p141_p9), %v1468_v23, %v1467_v22  ;;  %v1470_v27 = vld [vmem:[%s2839_s1 + $0x70] sm:$0xff] (!%p141_p9)  ;;  %v1471_v30 = vld [vmem:[%s2839_s1 + $0x78] sm:$0xff] (!%p141_p9)  ;;  %v1472_v31 = vld [vmem:[%s2839_s1 + $0x80] sm:$0xff] (!%p141_p9)  ;;  %s2244_s30 = sshll.u32 (!%p141_p9), %s2306_s29, 4  ;;  %s2245_s30 = int_to_ptr.vmem [resolvable:$false] %s2244_s30 }
  0x13   : > { %v2005_v29 = vpack.c.bf16 (!%p141_p9), %v1470_v27, %v1469_v26  ;;  %v2009_v32 = vpack.c.bf16 (!%p141_p9), %v1472_v31, %v1471_v30  ;;  %v1473_v33 = vld [vmem:[%s2839_s1 + $0x88] sm:$0xff] (!%p141_p9)  ;;  %v1476_v34 = vld [vmem:[%s2839_s1 + $0x90] sm:$0xff] (!%p141_p9)  ;;  %v1477_v35 = vld [vmem:[%s2839_s1 + $0x98] sm:$0xff] (!%p141_p9)  ;;  %s2246_s4 = scalar_lea.vmem (!%p141_p9), %s2245_s30, 512 }
  0x14   : > { %v1478_v36 = vld [vmem:[%s2839_s1 + $0xa0] sm:$0xff] (!%p141_p9)  ;;  %v1479_v37 = vld [vmem:[%s2839_s1 + $0xa8] sm:$0xff] (!%p141_p9)  ;;  %v2013_v38 = vpack.c.bf16 (!%p141_p9), %v1477_v35, %v1476_v34  ;;  %v1480_v41 = vld [vmem:[%s2839_s1 + $0xb0] sm:$0xff] (!%p141_p9) }
  0x15   : > { %s165_s5 = scalar_select %p164_p10, %s2350_s16, 1  ;;  %1988 = vmatpush3.bf16.msra.mxu0 %v1985_v5  ;;  %v2017_v39 = vpack.c.bf16 %v1479_v37, %v1478_v36  ;;  %v1481_v42 = vld [vmem:[%s2839_s1 + $0xb8] sm:$0xff]  ;;  %v1482_v45 = vld [vmem:[%s2839_s1 + $0xc0] sm:$0xff]  ;;  %v1483_v46 = vld [vmem:[%s2839_s1 + $0xc8] sm:$0xff] }
  0x16   : > { %1990 = vmatprep.subr.bf16.mxu0 %v1989_v9  ;;  %v2021_v44 = vpack.c.bf16 %v1481_v42, %v1480_v41  ;;  %v2025_v47 = vpack.c.bf16 %v1483_v46, %v1482_v45  ;;  %v1484_v48 = vld [vmem:[%s2839_s1 + $0xd0] sm:$0xff]  ;;  %v1487_v50 = vld [vmem:[%s2839_s1 + $0xd8] sm:$0xff]  ;;  %v1488_v51 = vld [vmem:[%s2839_s1 + $0xe0] sm:$0xff] }
  0x17   : > { %s1595_s10 = sshll.u32 %s165_s5, 4  ;;  %v1489_v52 = vld [vmem:[%s2839_s1 + $0xe8] sm:$0xff]  ;;  %v2029_v53 = vpack.c.bf16 %v1488_v51, %v1487_v50  ;;  %v1490_v54 = vld [vmem:[%s2839_s1 + $0xf0] sm:$0xff]  ;;  %v1491_v56 = vld [vmem:[%s2839_s1 + $0xf8] sm:$0xff] }
  0x18   : > { %s168_s19 = scalar_lea.vmem %s2838_s0, %s1595_s10  ;;  %v2033_v55 = vpack.c.bf16 %v1490_v54, %v1489_v52  ;;  %v1492_v57 = vld [vmem:[%s2839_s1 + $0x100] sm:$0xff]  ;;  %v1493_v59 = vld [vmem:[%s2839_s1 + $0x108] sm:$0xff]  ;;  %v1494_v60 = vld [vmem:[%s2839_s1 + $0x110] sm:$0xff] }
  0x19   : > { %v2402_v10 = vld [vmem:[%s168_s19] sm:$0xff]  ;;  %v2412_v13 = vld [vmem:[%s168_s19 + $0x8] sm:$0xff]  ;;  %1992 = vmatpush3.bf16.msra.mxu0 %v1989_v9  ;;  %2030 = vmatprep.subr.bf16.mxu1 %v2029_v53  ;;  %v2037_v58 = vpack.c.bf16 %v1492_v57, %v1491_v56  ;;  %v2041_v61 = vpack.c.bf16 %v1494_v60, %v1493_v59  ;;  %v1495_v2 = vld [vmem:[%s2839_s1 + $0x118] sm:$0xff]  ;;  %s163_s19 = scalar_lea.vmem [#allocation3], %s1458_s8 }
  0x1a   : > { %183 = vrot.lane.b32.xlu0 %v2402_v10, %s2305_s27  ;;  %1994 = vmatprep.subr.bf16.mxu0 %v1993_v14  ;;  %v176_v62 = vld [vmem:[%s2840_s2] sm:$0xff]  ;;  %v177_v63 = vld [vmem:[%s2840_s2 + $0x8] sm:$0xff]  ;;  %v1501_v16 = vld [vmem:[%s2839_s1 + $0x138] sm:$0xff]  ;;  %s1392_s20 = sshll.u32 %s163_s19, 4  ;;  %s2794_s20 = int_to_ptr.vmem [resolvable:$true] %s1392_s20 }
  0x1b   : > { %2032 = vmatpush3.bf16.msra.mxu1 %v2029_v53  ;;  %v1498_v3 = vld [vmem:[%s2839_s1 + $0x120] sm:$0xff]  ;;  %v1499_v4 = vld [vmem:[%s2839_s1 + $0x128] sm:$0xff]  ;;  %v1504_v23 = vld [vmem:[%s2839_s1 + $0x150] sm:$0xff]  ;;  %s2240_s28 = scalar_lea.vmem %s2794_s20, 256  ;;  %p2247_p0 = scmp.lt.s32.totalorder %s2794_s20, %s2245_s30 }
  0x1c   : > { %2034 = vmatprep.subr.bf16.mxu1 %v2033_v55  ;;  %v2045_v6 = vpack.c.bf16 %v1499_v4, %v1498_v3  ;;  %v1506_v26 = vld [vmem:[%s2839_s1 + $0x160] sm:$0xff]  ;;  %v1509_v27 = vld [vmem:[%s2839_s1 + $0x168] sm:$0xff]  ;;  %v1514_v35 = vld [vmem:[%s2839_s1 + $0x190] sm:$0xff]  ;;  %p2241_p11 = scmp.ne.s32.totalorder %s2794_s20, %s2240_s28  ;;  %p2248_p1 = scmp.lt.s32.totalorder %s2246_s4, %s2240_s28 }
  0x1d   : > { %1996 = vmatpush3.bf16.msra.mxu0 %v1993_v14  ;;  %v1512_v30 = vld [vmem:[%s2839_s1 + $0x180] sm:$0xff]  ;;  %v1513_v34 = vld [vmem:[%s2839_s1 + $0x188] sm:$0xff]  ;;  %v1529_v50 = vld [vmem:[%s2839_s1 + $0x1d8] sm:$0xff] }
  0x1e   : > { %185 = vrot.lane.b32.xlu0 %v2412_v13, %s2305_s27  ;;  %1745 = vmatprep.subr.mxu0 %v202_v15  ;;  %v2069_v37 = vpack.c.bf16 %v1514_v35, %v1513_v34  ;;  %v1517_v41 = vld [vmem:[%s2839_s1 + $0x1a8] sm:$0xff]  ;;  %v1526_v45 = vld [vmem:[%s2839_s1 + $0x1c0] sm:$0xff]  ;;  %v1462_v56 = vld [vmem:[%s2840_s2 + $0x18] sm:$0xff]  ;;  %p2242_p12 = pnand %p2241_p11, %p2367_p5  ;;  %p2249_p2 = por %p2248_p1, %p2247_p0 }
  0x1f   : > { %2036 = vmatpush3.bf16.msra.mxu1 %v2033_v55  ;;  %v1530_v52 = vld [vmem:[%s2839_s1 + $0x1e0] sm:$0xff]  ;;  %v1531_v53 = vld [vmem:[%s2839_s1 + $0x1e8] sm:$0xff]  ;;  %v1532_v55 = vld [vmem:[%s2839_s1 + $0x1f0] sm:$0xff] }
  0x20   : > { %2038 = vmatprep.subr.bf16.mxu1 %v2037_v58  ;;  %v2089_v54 = vpack.c.bf16 %v1531_v53, %v1530_v52  ;;  %v1535_v57 = vld [vmem:[%s2839_s1 + $0x1f8] sm:$0xff]  ;;  %v1461_v59 = vld [vmem:[%s2840_s2 + $0x10] sm:$0xff]  ;;  %v1557_v34 = vld [vmem:[%s2839_s1 + $0x288] sm:$0xff]  ;;  %p2243_p13 = pneg %p2242_p12 }
  0x21   : > { %1746 = vmatpush3.msra.mxu0 %v202_v15  ;;  %v1500_v15 = vld [vmem:[%s2839_s1 + $0x130] sm:$0xff] }
  0x22   : > { %1998 = vmatprep.subr.bf16.mxu0 %v1997_v18  ;;  %v2049_v17 = vpack.c.bf16 %v1501_v16, %v1500_v15  ;;  %v1542_v15 = vld [vmem:[%s2839_s1 + $0x230] sm:$0xff]  ;;  %p2250_p3 = pnand %p2249_p2, %p2243_p13 }
  0x23   : > { %2040 = vmatpush3.bf16.msra.mxu1 %v2037_v58  ;;  %v1536_v58 = vld [vmem:[%s2839_s1 + $0x200] sm:$0xff]  ;;  %v1558_v35 = vld [vmem:[%s2839_s1 + $0x290] sm:$0xff] }
  0x24   : > { %2042 = vmatprep.subr.bf16.mxu1 %v2041_v61  ;;  %v2093_v60 = vpack.c.bf16 %v1536_v58, %v1535_v57 }
  0x27   : > { %2044 = vmatpush3.bf16.msra.mxu1 %v2041_v61 }
  0x28   : > { %1808 = vmatprep.subr.mxu1 %v1495_v2 }
  0x2b   : > { %1809 = vmatpush3.msra.mxu1 %v1495_v2 }
  0x2c   : > { %2046 = vmatprep.subr.bf16.mxu1 %v2045_v6 }
  0x8c   : > { %v184_v19 = vpop.permute.xlu0 %183 }
  0x8d   : > { %190 = vst.msk [vmem:[#allocation2 + $0x1] sm:$0xff] %vm189_vm2, %v184_v19  ;;  %v1502_v19 = vld [vmem:[%s2839_s1 + $0x140] sm:$0xff] }
  0x90   : > { %v186_v20 = vpop.permute.xlu0 %185 }
  0x91   : > { %191 = vst.msk [vmem:[#allocation2 + $0x9] sm:$0xff] %vm189_vm2, %v186_v20  ;;  %v1503_v20 = vld [vmem:[%s2839_s1 + $0x148] sm:$0xff] }
  0x92   : > { %v2053_v22 = vpack.c.bf16 %v1503_v20, %v1502_v19  ;;  %v1547_v19 = vld [vmem:[%s2839_s1 + $0x248] sm:$0xff]  ;;  %v1548_v20 = vld [vmem:[%s2839_s1 + $0x250] sm:$0xff] }
  0x94   : > { %v192_v21 = vld [vmem:[#allocation2] sm:$0xff] }
  0x95   : > { %1747 = vmatprep.mubr.msk.f32.mxu0 %vm169_vm0, %v192_v21  ;;  %v286_v28 = vld [vmem:[#allocation2 + $0x1] sm:$0xff] }
  0x98   : > { %v193_v25 = vld [vmem:[#allocation2 + $0x8] sm:$0xff] }
  0x99   : > { %1748 = vmatmul.mubr.msk.f32.vlgmr.msra.gmra.mrb[0].mxu0 %vm169_vm0, %v193_v25  ;;  %v287_v40 = vld [vmem:[#allocation2 + $0x9] sm:$0xff] }
  0x9a   : > { %2000 = vmatpush3.bf16.msra.mxu0 %v1997_v18  ;;  %1768 = vmatprep.mubr.msk.f32.mxu0 %vm169_vm0, %v286_v28  ;;  %v381_v43 = vld [vmem:[#allocation2 + $0x2] sm:$0xff]  ;;  %v382_v49 = vld [vmem:[#allocation2 + $0xa] sm:$0xff] }
  0x9b   : > { %2002 = vmatprep.subr.bf16.mxu0 %v2001_v24  ;;  %v1510_v28 = vld [vmem:[%s2839_s1 + $0x170] sm:$0xff] }
  0x9c   : > { %v2061_v31 = vpack.c.bf16 %v1510_v28, %v1509_v27 }
  0x9e   : > { %2004 = vmatpush3.bf16.msra.mxu0 %v2001_v24  ;;  %v1505_v24 = vld [vmem:[%s2839_s1 + $0x158] sm:$0xff] }
  0x9f   : > { %2006 = vmatprep.subr.bf16.mxu0 %v2005_v29  ;;  %v2057_v25 = vpack.c.bf16 %v1505_v24, %v1504_v23 }
  0xa2   : > { %2008 = vmatpush3.bf16.msra.mxu0 %v2005_v29  ;;  %v1511_v29 = vld [vmem:[%s2839_s1 + $0x178] sm:$0xff] }
  0xa3   : > { %2010 = vmatprep.subr.bf16.mxu0 %v2009_v32 }
  0xa6   : > { %2012 = vmatpush3.bf16.msra.mxu0 %v2009_v32  ;;  %v2065_v32 = vpack.c.bf16 %v1512_v30, %v1511_v29  ;;  %v1552_v29 = vld [vmem:[%s2839_s1 + $0x270] sm:$0xff]  ;;  %v1553_v30 = vld [vmem:[%s2839_s1 + $0x278] sm:$0xff] }
  0xa7   : > { %1766 = vmatprep.subr.mxu0 %v1473_v33 }
  0xaa   : > { %1767 = vmatpush3.msra.mxu0 %v1473_v33 }
  0xab   : > { %1769 = vmatmul.mubr.msk.f32.vlgmr.msra.gmra.mrb[0].mxu0 %vm169_vm0, %v287_v40  ;;  %2014 = vmatprep.subr.bf16.mxu0 %v2013_v38 }
  0xac   : > { %2016 = vmatpush3.bf16.msra.mxu0 %v2013_v38  ;;  %1789 = vmatprep.mubr.msk.f32.mxu0 %vm169_vm0, %v381_v43  ;;  %v1515_v38 = vld [vmem:[%s2839_s1 + $0x198] sm:$0xff]  ;;  %v1524_v43 = vld [vmem:[%s2839_s1 + $0x1b0] sm:$0xff] }
  0xad   : > { %2018 = vmatprep.subr.bf16.mxu0 %v2017_v39 }
  0xb0   : > { %2020 = vmatpush3.bf16.msra.mxu0 %v2017_v39  ;;  %v1516_v39 = vld [vmem:[%s2839_s1 + $0x1a0] sm:$0xff] }
  0xb1   : > { %2022 = vmatprep.subr.bf16.mxu0 %v2021_v44  ;;  %v2073_v40 = vpack.c.bf16 %v1516_v39, %v1515_v38  ;;  %v1560_v38 = vld [vmem:[%s2839_s1 + $0x2a0] sm:$0xff] }
  0xb4   : > { %2024 = vmatpush3.bf16.msra.mxu0 %v2021_v44  ;;  %v1525_v44 = vld [vmem:[%s2839_s1 + $0x1b8] sm:$0xff] }
  0xb5   : > { %2026 = vmatprep.subr.bf16.mxu0 %v2025_v47  ;;  %v2077_v46 = vpack.c.bf16 %v1525_v44, %v1524_v43  ;;  %v1563_v43 = vld [vmem:[%s2839_s1 + $0x2b8] sm:$0xff]  ;;  %v1564_v44 = vld [vmem:[%s2839_s1 + $0x2c0] sm:$0xff] }
  0xb8   : > { %2028 = vmatpush3.bf16.msra.mxu0 %v2025_v47  ;;  %v1527_v47 = vld [vmem:[%s2839_s1 + $0x1c8] sm:$0xff] }
  0xb9   : > { %1787 = vmatprep.subr.mxu0 %v1484_v48 }
  0xbc   : > { %1788 = vmatpush3.msra.mxu0 %v1484_v48  ;;  %v2081_v48 = vpack.c.bf16 %v1527_v47, %v1526_v45  ;;  %v2137_v45 = vpack.c.bf16 %v1564_v44, %v1563_v43  ;;  %v1521_v47 = vld [vmem:[%s2840_s2 + $0x28] sm:$0xff] }
  0xbd   : > { %1790 = vmatmul.mubr.msk.f32.vlgmr.msra.gmra.mrb[0].mxu0 %vm169_vm0, %v382_v49  ;;  %v1528_v49 = vld [vmem:[%s2839_s1 + $0x1d0] sm:$0xff]  ;;  %2078 = vmatprep.subr.bf16.mxu0 %v2077_v46 }
  0xbe   : > { %2080 = vmatpush3.bf16.msra.mxu0 %v2077_v46  ;;  %v2085_v51 = vpack.c.bf16 %v1529_v50, %v1528_v49  ;;  %v1565_v46 = vld [vmem:[%s2839_s1 + $0x2c8] sm:$0xff]  ;;  %v1569_v49 = vld [vmem:[%s2839_s1 + $0x2d8] sm:$0xff]  ;;  %v1520_v50 = vld [vmem:[%s2840_s2 + $0x20] sm:$0xff] }
  0xbf   : > { %2082 = vmatprep.subr.bf16.mxu0 %v2081_v48 }
  0xc2   : > { %2084 = vmatpush3.bf16.msra.mxu0 %v2081_v48  ;;  %v1568_v48 = vld [vmem:[%s2839_s1 + $0x2d0] sm:$0xff] }
  0xc3   : > { %2086 = vmatprep.subr.bf16.mxu0 %v2085_v51 }
  0xc6   : > { %2088 = vmatpush3.bf16.msra.mxu0 %v2085_v51  ;;  %v2141_v51 = vpack.c.bf16 %v1569_v49, %v1568_v48 }
  0xc7   : > { %2090 = vmatprep.subr.bf16.mxu0 %v2089_v54 }
  0xca   : > { %2092 = vmatpush3.bf16.msra.mxu0 %v2089_v54 }
  0xcb   : > { %1871 = vmatprep.subr.mxu0 %v1532_v55 }
  0xce   : > { %1872 = vmatpush3.msra.mxu0 %v1532_v55 }
  0xcf   : > { %2094 = vmatprep.subr.bf16.mxu0 %v2093_v60 }
 0x190   : > { %v1791_v0 = vpop.f32.mrb[0].mxu0 }
 0x191   : > { %v465_v1 = vpop.f32.mrb[1].mxu0  ;;  %v2173_v7 = vadd.f32 %v1791_v0, %v177_v63 }
 0x192   : > { %v2174_v5 = vadd.f32 %v465_v1, %v176_v62 }
 0x193   : > { %v477_v9 = vmax.f32 %v2173_v7, 0.0 }
 0x194   : > { %v476_v8 = vmax.f32 %v2174_v5, 0.0 }
 0x196   : > { %480 = vrot.lane.b32.xlu1 %v476_v8, %s2305_s27  ;;  %v1539_v8 = vld [vmem:[%s2839_s1 + $0x218] sm:$0xff] }
 0x19a   : > { %482 = vrot.lane.b32.xlu1 %v477_v9, %s2305_s27  ;;  %v1540_v9 = vld [vmem:[%s2839_s1 + $0x220] sm:$0xff] }
 0x208   : > { %v481_v11 = vpop.permute.xlu1 %480 }
 0x209   : > { %486 = vst.msk [vmem:[#allocation2 + $0x1] sm:$0xff] %vm189_vm2, %v481_v11 }
 0x20c   : > { %v483_v12 = vpop.permute.xlu1 %482 }
 0x20d   : > { %487 = vst.msk [vmem:[#allocation2 + $0x9] sm:$0xff] %vm189_vm2, %v483_v12  ;;  %v2101_v12 = vpack.c.bf16 %v1540_v9, %v1539_v8  ;;  %v1576_v8 = vld [vmem:[%s2839_s1 + $0x310] sm:$0xff]  ;;  %v1579_v9 = vld [vmem:[%s2839_s1 + $0x318] sm:$0xff] }
 0x210   : > { %v488_v14 = vld [vmem:[#allocation2] sm:$0xff] }
 0x211   : > { %1810 = vmatprep.mubr.msk.f32.mxu1 %vm169_vm0, %v488_v14  ;;  %v583_v21 = vld [vmem:[#allocation2 + $0x1] sm:$0xff] }
 0x212   : > { %v1541_v14 = vld [vmem:[%s2839_s1 + $0x228] sm:$0xff] }
 0x213   : > { %v2105_v16 = vpack.c.bf16 %v1542_v15, %v1541_v14  ;;  %v1582_v14 = vld [vmem:[%s2839_s1 + $0x330] sm:$0xff] }
 0x214   : > { %v489_v18 = vld [vmem:[#allocation2 + $0x8] sm:$0xff] }
 0x215   : > { %1811 = vmatmul.mubr.msk.f32.vlgmr.msra.gmra.mrb[0].mxu1 %vm169_vm0, %v489_v18  ;;  %v584_v33 = vld [vmem:[#allocation2 + $0x9] sm:$0xff]  ;;  %v1546_v18 = vld [vmem:[%s2839_s1 + $0x240] sm:$0xff] }
 0x216   : > { %2048 = vmatpush3.bf16.msra.mxu1 %v2045_v6  ;;  %1831 = vmatprep.mubr.msk.f32.mxu1 %vm169_vm0, %v583_v21  ;;  %v678_v36 = vld [vmem:[#allocation2 + $0x2] sm:$0xff]  ;;  %v679_v42 = vld [vmem:[#allocation2 + $0xa] sm:$0xff]  ;;  %v1549_v21 = vld [vmem:[%s2839_s1 + $0x258] sm:$0xff] }
 0x217   : > { %2050 = vmatprep.subr.bf16.mxu1 %v2049_v17  ;;  %v2113_v23 = vpack.c.bf16 %v1549_v21, %v1548_v20 }
 0x21a   : > { %2052 = vmatpush3.bf16.msra.mxu1 %v2049_v17  ;;  %v1543_v17 = vld [vmem:[%s2839_s1 + $0x238] sm:$0xff] }
 0x21b   : > { %2054 = vmatprep.subr.bf16.mxu1 %v2053_v22 }
 0x21e   : > { %2056 = vmatpush3.bf16.msra.mxu1 %v2053_v22  ;;  %v2109_v22 = vpack.c.bf16 %v1547_v19, %v1546_v18  ;;  %v1583_v18 = vld [vmem:[%s2839_s1 + $0x338] sm:$0xff]  ;;  %v1584_v19 = vld [vmem:[%s2839_s1 + $0x340] sm:$0xff] }
 0x21f   : > { %2058 = vmatprep.subr.bf16.mxu1 %v2057_v25  ;;  %v2165_v21 = vpack.c.bf16 %v1584_v19, %v1583_v18 }
 0x222   : > { %2060 = vmatpush3.bf16.msra.mxu1 %v2057_v25  ;;  %v1550_v25 = vld [vmem:[%s2839_s1 + $0x260] sm:$0xff] }
 0x223   : > { %1829 = vmatprep.subr.mxu1 %v1506_v26 }
 0x226   : > { %1830 = vmatpush3.msra.mxu1 %v1506_v26  ;;  %v1551_v26 = vld [vmem:[%s2839_s1 + $0x268] sm:$0xff] }
 0x227   : > { %1832 = vmatmul.mubr.msk.f32.vlgmr.msra.gmra.mrb[0].mxu1 %vm169_vm0, %v584_v33  ;;  %2062 = vmatprep.subr.bf16.mxu1 %v2061_v31  ;;  %v2117_v28 = vpack.c.bf16 %v1551_v26, %v1550_v25  ;;  %v1587_v25 = vld [vmem:[%s2839_s1 + $0x358] sm:$0xff] }
 0x228   : > { %2064 = vmatpush3.bf16.msra.mxu1 %v2061_v31  ;;  %1852 = vmatprep.mubr.msk.f32.mxu1 %vm169_vm0, %v678_v36  ;;  %v2121_v31 = vpack.c.bf16 %v1553_v30, %v1552_v29  ;;  %v1559_v36 = vld [vmem:[%s2839_s1 + $0x298] sm:$0xff] }
 0x229   : > { %2066 = vmatprep.subr.bf16.mxu1 %v2065_v32  ;;  %v2129_v39 = vpack.c.bf16 %v1560_v38, %v1559_v36 }
 0x22c   : > { %2068 = vmatpush3.bf16.msra.mxu1 %v2065_v32  ;;  %v1554_v32 = vld [vmem:[%s2839_s1 + $0x280] sm:$0xff] }
 0x22d   : > { %2070 = vmatprep.subr.bf16.mxu1 %v2069_v37 }
 0x230   : > { %2072 = vmatpush3.bf16.msra.mxu1 %v2069_v37  ;;  %v2125_v37 = vpack.c.bf16 %v1558_v35, %v1557_v34 }
 0x231   : > { %2074 = vmatprep.subr.bf16.mxu1 %v2073_v40 }
 0x234   : > { %2076 = vmatpush3.bf16.msra.mxu1 %v2073_v40  ;;  %v1561_v40 = vld [vmem:[%s2839_s1 + $0x2a8] sm:$0xff] }
 0x235   : > { %1850 = vmatprep.subr.mxu1 %v1517_v41 }
 0x238   : > { %1851 = vmatpush3.msra.mxu1 %v1517_v41  ;;  %v1562_v41 = vld [vmem:[%s2839_s1 + $0x2b0] sm:$0xff] }
 0x239   : > { %1853 = vmatmul.mubr.msk.f32.vlgmr.msra.gmra.mrb[0].mxu1 %vm169_vm0, %v679_v42  ;;  %2126 = vmatprep.subr.bf16.mxu1 %v2125_v37  ;;  %v2133_v42 = vpack.c.bf16 %v1562_v41, %v1561_v40 }
 0x23a   : > { %2128 = vmatpush3.bf16.msra.mxu1 %v2125_v37 }
 0x23b   : > { %2130 = vmatprep.subr.bf16.mxu1 %v2129_v39 }
 0x23e   : > { %2132 = vmatpush3.bf16.msra.mxu1 %v2129_v39 }
 0x23f   : > { %2134 = vmatprep.subr.bf16.mxu1 %v2133_v42 }
 0x242   : > { %2136 = vmatpush3.bf16.msra.mxu1 %v2133_v42 }
 0x243   : > { %2138 = vmatprep.subr.bf16.mxu1 %v2137_v45 }
 0x246   : > { %2140 = vmatpush3.bf16.msra.mxu1 %v2137_v45 }
 0x247   : > { %1934 = vmatprep.subr.mxu1 %v1565_v46 }
 0x24a   : > { %1935 = vmatpush3.msra.mxu1 %v1565_v46 }
 0x24b   : > { %2142 = vmatprep.subr.bf16.mxu1 %v2141_v51 }
 0x30c   : > { %v1854_v61 = vpop.f32.mrb[0].mxu1 }
 0x30d   : > { %v2175_v62 = vadd.f32 %v1854_v61, %v1462_v56  ;;  %v762_v63 = vpop.f32.mrb[1].mxu1  ;;  %v1571_v61 = vld [vmem:[%s2839_s1 + $0x2e8] sm:$0xff] }
 0x30e   : > { %v2176_v0 = vadd.f32 %v1461_v59, %v762_v63 }
 0x30f   : > { %v2618_v1 = vadd.f32 %v2175_v62, %v2412_v13  ;;  %v1537_v13 = vld [vmem:[%s2839_s1 + $0x208] sm:$0xff] }
 0x310   : > { %v2621_v2 = vadd.f32 %v2176_v0, %v2402_v10  ;;  %v1538_v10 = vld [vmem:[%s2839_s1 + $0x210] sm:$0xff] }
 0x311   : > { %785 = vrot.lane.b32.xlu1 %v2618_v1, %s2305_s27  ;;  %v2097_v7 = vpack.c.bf16 %v1538_v10, %v1537_v13 }
 0x312   : > { %783 = vrot.lane.b32.xlu0 %v2621_v2, %s2305_s27 }
 0x383   : > { %v786_v3 = vpop.permute.xlu1 %785 }
 0x384   : > { %790 = vst.msk [vmem:[#allocation2 + $0x9] sm:$0xff] %vm189_vm2, %v786_v3  ;;  %v784_v4 = vpop.permute.xlu0 %783  ;;  %v1572_v3 = vld [vmem:[%s2839_s1 + $0x2f0] sm:$0xff] }
 0x385   : > { %789 = vst.msk [vmem:[#allocation2 + $0x1] sm:$0xff] %vm189_vm2, %v784_v4  ;;  %v1573_v4 = vld [vmem:[%s2839_s1 + $0x2f8] sm:$0xff] }
 0x386   : > { %v2149_v10 = vpack.c.bf16 %v1573_v4, %v1572_v3 }
 0x38b   : > { %v887_v24 = vld [vmem:[#allocation2 + $0x9] sm:$0xff] }
 0x38c   : > { %v791_v5 = vld [vmem:[#allocation2] sm:$0xff]  ;;  %v792_v6 = vld [vmem:[#allocation2 + $0x8] sm:$0xff] }
 0x38d   : > { %1873 = vmatprep.mubr.msk.f32.mxu0 %vm169_vm0, %v791_v5  ;;  %v886_v11 = vld [vmem:[#allocation2 + $0x1] sm:$0xff]  ;;  %v982_v33 = vld [vmem:[#allocation2 + $0xa] sm:$0xff] }
 0x38e   : > { %1874 = vmatmul.mubr.msk.f32.vlgmr.msra.gmra.mrb[2].mxu0 %vm169_vm0, %v792_v6  ;;  %v981_v27 = vld [vmem:[#allocation2 + $0x2] sm:$0xff] }
 0x38f   : > { %2096 = vmatpush3.bf16.msra.mxu0 %v2093_v60  ;;  %1894 = vmatprep.mubr.msk.f32.mxu0 %vm169_vm0, %v886_v11  ;;  %v1570_v60 = vld [vmem:[%s2839_s1 + $0x2e0] sm:$0xff]  ;;  %v1575_v6 = vld [vmem:[%s2839_s1 + $0x308] sm:$0xff] }
 0x390   : > { %2098 = vmatprep.subr.bf16.mxu0 %v2097_v7  ;;  %v2145_v0 = vpack.c.bf16 %v1571_v61, %v1570_v60  ;;  %v1574_v5 = vld [vmem:[%s2839_s1 + $0x300] sm:$0xff] }
 0x391   : > { %v1580_v11 = vld [vmem:[%s2839_s1 + $0x320] sm:$0xff] }
 0x392   : > { %v2157_v15 = vpack.c.bf16 %v1580_v11, %v1579_v9 }
 0x393   : > { %2100 = vmatpush3.bf16.msra.mxu0 %v2097_v7  ;;  %v2153_v7 = vpack.c.bf16 %v1575_v6, %v1574_v5 }
 0x394   : > { %2102 = vmatprep.subr.bf16.mxu0 %v2101_v12 }
 0x397   : > { %2104 = vmatpush3.bf16.msra.mxu0 %v2101_v12  ;;  %v1581_v12 = vld [vmem:[%s2839_s1 + $0x328] sm:$0xff] }
 0x398   : > { %2106 = vmatprep.subr.bf16.mxu0 %v2105_v16 }
 0x39b   : > { %2108 = vmatpush3.bf16.msra.mxu0 %v2105_v16  ;;  %v2161_v16 = vpack.c.bf16 %v1582_v14, %v1581_v12 }
 0x39c   : > { %1892 = vmatprep.subr.mxu0 %v1543_v17 }
 0x39f   : > { %1893 = vmatpush3.msra.mxu0 %v1543_v17 }
 0x3a0   : > { %1895 = vmatmul.mubr.msk.f32.vlgmr.msra.gmra.mrb[2].mxu0 %vm169_vm0, %v887_v24  ;;  %2110 = vmatprep.subr.bf16.mxu0 %v2109_v22 }
 0x3a1   : > { %2112 = vmatpush3.bf16.msra.mxu0 %v2109_v22  ;;  %1915 = vmatprep.mubr.msk.f32.mxu0 %vm169_vm0, %v981_v27  ;;  %v1585_v22 = vld [vmem:[%s2839_s1 + $0x348] sm:$0xff]  ;;  %v1523_v27 = vld [vmem:[%s2840_s2 + $0x38] sm:$0xff] }
 0x3a2   : > { %2114 = vmatprep.subr.bf16.mxu0 %v2113_v23 }
 0x3a5   : > { %2116 = vmatpush3.bf16.msra.mxu0 %v2113_v23  ;;  %v1586_v23 = vld [vmem:[%s2839_s1 + $0x350] sm:$0xff] }
 0x3a6   : > { %2118 = vmatprep.subr.bf16.mxu0 %v2117_v28  ;;  %v2169_v24 = vpack.c.bf16 %v1586_v23, %v1585_v22 }
 0x3a9   : > { %2120 = vmatpush3.bf16.msra.mxu0 %v2117_v28  ;;  %v1522_v28 = vld [vmem:[%s2840_s2 + $0x30] sm:$0xff] }
 0x3aa   : > { %2122 = vmatprep.subr.bf16.mxu0 %v2121_v31 }
 0x3ad   : > { %2124 = vmatpush3.bf16.msra.mxu0 %v2121_v31 }
 0x3ae   : > { %1913 = vmatprep.subr.mxu0 %v1554_v32 }
 0x3b1   : > { %1914 = vmatpush3.msra.mxu0 %v1554_v32 }
 0x3b2   : > { %1916 = vmatmul.mubr.msk.f32.vlgmr.msra.gmra.mrb[2].mxu0 %vm169_vm0, %v982_v33 }
 0x485   : > { %v1917_v52 = vpop.f32.mrb[2].mxu0 }
 0x486   : > { %v2177_v53 = vadd.f32 %v1917_v52, %v1521_v47  ;;  %v1065_v54 = vpop.f32.mrb[3].mxu0 }
 0x487   : > { %v2178_v55 = vadd.f32 %v1520_v50, %v1065_v54 }
 0x488   : > { %v1077_v56 = vmax.f32 %v2177_v53, 0.0 }
 0x489   : > { %v1076_v57 = vmax.f32 %v2178_v55, 0.0 }
 0x48a   : > { %1082 = vrot.lane.b32.xlu1 %v1077_v56, %s2305_s27 }
 0x48b   : > { %1080 = vrot.lane.b32.xlu0 %v1076_v57, %s2305_s27  ;;  %s1596_s27 = sshll.u32 %s2350_s16, 8  ;;  %s2797_s16 = scalar_lea.sflag [#allocation4], %s161_s7 }
 0x48c   : > { %s2792_s26 = scalar_lea.hbm %s2841_s3, %s1596_s27 }
 0x4fc   : > { %v1083_v58 = vpop.permute.xlu1 %1082 }
 0x4fd   : > { %1087 = vst.msk [vmem:[#allocation2 + $0x9] sm:$0xff] %vm189_vm2, %v1083_v58  ;;  %v1081_v59 = vpop.permute.xlu0 %1080 }
 0x4fe   : > { %1086 = vst.msk [vmem:[#allocation2 + $0x1] sm:$0xff] %vm189_vm2, %v1081_v59 }
 0x504   : > { %v1184_v17 = vld [vmem:[#allocation2 + $0x9] sm:$0xff] }
 0x505   : > { %v1088_v62 = vld [vmem:[#allocation2] sm:$0xff]  ;;  %v1089_v63 = vld [vmem:[#allocation2 + $0x8] sm:$0xff] }
 0x506   : > { %1936 = vmatprep.mubr.msk.f32.mxu1 %vm169_vm0, %v1088_v62  ;;  %v1183_v13 = vld [vmem:[#allocation2 + $0x1] sm:$0xff]  ;;  %v1279_v26 = vld [vmem:[#allocation2 + $0xa] sm:$0xff] }
 0x507   : > { %1937 = vmatmul.mubr.msk.f32.vlgmr.msra.gmra.mrb[2].mxu1 %vm169_vm0, %v1089_v63  ;;  %v1278_v20 = vld [vmem:[#allocation2 + $0x2] sm:$0xff] }
 0x508   : > { %2144 = vmatpush3.bf16.msra.mxu1 %v2141_v51  ;;  %1957 = vmatprep.mubr.msk.f32.mxu1 %vm169_vm0, %v1183_v13 }
 0x509   : > { %2146 = vmatprep.subr.bf16.mxu1 %v2145_v0 }
 0x50c   : > { %2148 = vmatpush3.bf16.msra.mxu1 %v2145_v0 }
 0x50d   : > { %2150 = vmatprep.subr.bf16.mxu1 %v2149_v10 }
 0x510   : > { %2152 = vmatpush3.bf16.msra.mxu1 %v2149_v10 }
 0x511   : > { %2154 = vmatprep.subr.bf16.mxu1 %v2153_v7 }
 0x514   : > { %2156 = vmatpush3.bf16.msra.mxu1 %v2153_v7 }
 0x515   : > { %1955 = vmatprep.subr.mxu1 %v1576_v8 }
 0x518   : > { %1956 = vmatpush3.msra.mxu1 %v1576_v8 }
 0x519   : > { %1958 = vmatmul.mubr.msk.f32.vlgmr.msra.gmra.mrb[2].mxu1 %vm169_vm0, %v1184_v17  ;;  %2158 = vmatprep.subr.bf16.mxu1 %v2157_v15 }
 0x51a   : > { %2160 = vmatpush3.bf16.msra.mxu1 %v2157_v15  ;;  %1978 = vmatprep.mubr.msk.f32.mxu1 %vm169_vm0, %v1278_v20 }
 0x51b   : > { %2162 = vmatprep.subr.bf16.mxu1 %v2161_v16 }
 0x51e   : > { %2164 = vmatpush3.bf16.msra.mxu1 %v2161_v16 }
 0x51f   : > { %2166 = vmatprep.subr.bf16.mxu1 %v2165_v21 }
 0x522   : > { %2168 = vmatpush3.bf16.msra.mxu1 %v2165_v21 }
 0x523   : > { %2170 = vmatprep.subr.bf16.mxu1 %v2169_v24 }
 0x526   : > { %2172 = vmatpush3.bf16.msra.mxu1 %v2169_v24 }
 0x527   : > { %1976 = vmatprep.subr.mxu1 %v1587_v25 }
 0x52a   : > { %1977 = vmatpush3.msra.mxu1 %v1587_v25 }
 0x52b   : > { %1979 = vmatmul.mubr.msk.f32.vlgmr.msra.gmra.mrb[2].mxu1 %vm169_vm0, %v1279_v26 }
 0x5fe   : > { %v1980_v29 = vpop.f32.mrb[2].mxu1 }
 0x5ff   : > { %v2179_v30 = vadd.f32 %v1980_v29, %v1523_v27  ;;  %v1362_v31 = vpop.f32.mrb[3].mxu1 }
 0x600   : > { %v2180_v32 = vadd.f32 %v1522_v28, %v1362_v31 }
 0x601   : > { %v1374_v33 = vadd.f32 %v2179_v30, %v2618_v1 }
 0x602   : > { %v1373_v34 = vadd.f32 %v2180_v32, %v2621_v2 }
 0x603   : > { %1377 = vst.msk [vmem:[%s163_s19 + $0x8] sm:$0xff] %vm1375_vm3, %v1374_v33 }
 0x604   : > { %1376 = vst.msk [vmem:[%s163_s19] sm:$0xff] %vm1375_vm3, %v1373_v34 }
 0x605   : > { %2253 = shalt.err (!%p2250_p3)
}
 0x606   : > { %s2254_s5 = scalar_lea.hbm %s2792_s26, 256  ;;  %s2258_s8 = scalar_lea.hbm %s2841_s3, 512 }
 0x607   : > { %p2255_p4 = scmp.ne.s32.totalorder %s2792_s26, %s2254_s5  ;;  %p2259_p9 = scmp.lt.u32.totalorder %s2792_s26, %s2841_s3 }
 0x608   : > { %p2260_p10 = scmp.lt.u32.totalorder %s2258_s8, %s2254_s5  ;;  %p2262_p12 = scmp.lt.u32.totalorder %s2254_s5, %s2792_s26 }
 0x609   : > { %p2256_p7 = pnand %p2255_p4, %p2367_p5 }
 0x60a   : > { %p2261_p11 = por %p2260_p10, %p2259_p9 }
 0x60b   : > { %p2257_p8 = pneg %p2256_p7 }
 0x60c   : > { %p2263_p13 = por %p2262_p12, %p2261_p11 }
 0x60e   : > { %p2264_p0 = pnand %p2263_p13, %p2257_p8 }
 0x610   : > { %2267 = shalt.err (!%p2264_p0)
}
 0x611   : > { %s2307_s11 = smov 128   ;;  %s2308_s17 = smov 8  }
 0x612   : > { %2197 = dma.vmem_to_hbm [thread:$0]  (%p2367_p5), %s2794_s20, 256, %s2792_s26, %s2797_s16, %s2307_s11, %s2307_s11, %s2308_s17  }
 0x613 PF: > { %p2203_p1 = scmp.ge.s32.totalorder %s2302_s15, 2  ;;  %s1407_s19 = sand.u32 1, %s2290_s12  }
 0x614   : > { %s1408_s27 = scalar_lea.sflag [#allocation4], %s1407_s19 }
 0x615   : > { %p2200_p2 = pnand %p2203_p1, %p2371_p6 }
 0x617   : > { %2285 = dma.done.wait (!%p2200_p2), %s1408_s27, 256  }
 0x618   : > { %2287 = vsyncadd (!%p2200_p2), %s1408_s27, 4294967040  ;;  %p13_p3 = scmp.ge.s32.totalorder %s2354_s18, 4   ;;  %s2844_s12 = smov %s2294_s13 }
 0x619   : > { %s2845_s13 = smov %s2298_s14  ;;  %s2846_s14 = smov %s2365_s21 }
 0x61a   : > { %s2847_s15 = smov %s2354_s18  ;;  %15 = sbr.rel (!%p13_p3) target bundleno = 3 (0x3), region = 81 }
 0x621   :  { %1413 = vsyncpa [#allocation4], 1 }
 0x622   :  { %1415 = vsyncpa [#allocation4 + $0x1], 1 }

</bundles_post_ra>
